<compile_context>
chip_gen: v7x
topology: tpu7x:2x2x1
jax: 0.10.0
libtpu: 0.0.40
codegen_flags: <defaults>
</compile_context>

<pallas_src>
import functools

import jax
import jax.numpy as jnp
from jax.experimental import pallas as pl
from jax.experimental.pallas import tpu as pltpu


def _round_up(x, m):
    return ((x + m - 1) // m) * m


def _channel_attention_kernel(x_ref, w1t_ref, w2t_ref, o_ref,
                              sum_acc, max_acc, *, hw, hw_tile, needs_mask):
    # x_ref  : (TB, C, hw_tile)     one HW chunk of one batch tile (native dtype)
    # w1t_ref: (C, hidden)          conv1 weight, squeezed + transposed
    # w2t_ref: (hidden, C)          conv2 weight, squeezed + transposed
    # o_ref  : (TB, C)              written only on the last HW chunk
    # sum_acc/max_acc: (TB, C, 128) f32 lane-partial accumulators (persist over k)
    k = pl.program_id(1)
    last = pl.num_programs(1) - 1
    n_sub = hw_tile // 128          # hw_tile is always a multiple of 128

    @pl.when(k == 0)
    def _init():
        sum_acc[...] = jnp.zeros_like(sum_acc)
        max_acc[...] = jnp.full_like(max_acc, -jnp.inf)

    def _accumulate(masked):
        def step(off):
            # off: lane offset into the chunk, multiple of 128 (static or dynamic)
            xs = x_ref[:, :, pl.ds(off, 128)].astype(jnp.float32)   # (TB, C, 128)
            if masked:
                # Mask after the f32 widen so -inf is always representable.
                col = jax.lax.broadcasted_iota(jnp.int32, xs.shape, dimension=2)
                valid = (k * hw_tile + off + col) < hw
                xs_sum = jnp.where(valid, xs, 0.0)
                xs_max = jnp.where(valid, xs, -jnp.inf)
            else:
                xs_sum = xs
                xs_max = xs
            # Pure VPU lane-partial accumulation (no cross-lane work here).
            sum_acc[...] += xs_sum
            max_acc[...] = jnp.maximum(max_acc[...], xs_max)

        if n_sub <= 8:
            for i in range(n_sub):              # static unroll, static offsets
                step(i * 128)
        else:
            def body(i, carry):
                step(pl.multiple_of(i * 128, 128))
                return carry
            jax.lax.fori_loop(0, n_sub, body, 0)

    if needs_mask:
        # Only the last chunk can extend past the real H*W: pay the mask cost
        # on that one chunk instead of every chunk.
        @pl.when(k != last)
        def _unmasked():
            _accumulate(masked=False)

        @pl.when(k == last)
        def _masked():
            _accumulate(masked=True)
    else:
        _accumulate(masked=False)

    @pl.when(k == last)
    def _finalize():
        # Single deferred cross-lane reduce + relayout, once per batch tile.
        avg = jnp.sum(sum_acc[...], axis=-1) * (1.0 / float(hw))    # (TB, C)
        mx = jnp.max(max_acc[...], axis=-1)                         # (TB, C)
        w1t = w1t_ref[...].astype(jnp.float32)                      # (C, hidden)
        w2t = w2t_ref[...].astype(jnp.float32)                      # (hidden, C)
        # MLP(avg) + MLP(max) = (relu(avg@W1ᵀ) + relu(max@W1ᵀ)) @ W2ᵀ
        h = (jnp.maximum(jnp.dot(avg, w1t, preferred_element_type=jnp.float32), 0.0)
             + jnp.maximum(jnp.dot(mx, w1t, preferred_element_type=jnp.float32), 0.0))
        y = jnp.dot(h, w2t, preferred_element_type=jnp.float32)     # (TB, C)
        o_ref[...] = jax.nn.sigmoid(y).astype(o_ref.dtype)


def _pick_batch_tile(b):
    """(TB, C) output/accumulator blocks need TB to be a multiple of 8 or the
    full batch dim.  Take the largest aligned tile; with B a multiple of 8 and
    B > 8 this also leaves >= 2 steps on the parallel axis for megacore."""
    if b <= 8:
        return b
    if b % 8 == 0:
        return 8
    return b   # fallback: whole batch as one full-dim tile


def channel_attention(x, w1, w2, *, hw_tile=None,
                      max_block_bytes=8 * 1024 * 1024):
    """x: (B, C, H, W) NCHW.  w1: (hidden, C, 1, 1), w2: (C, hidden, 1, 1)."""
    B, C, H, W = x.shape
    hidden = w1.shape[0]
    hw = H * W

    x3 = x.reshape(B, C, hw)                 # free reshape (contiguous)
    w1t = w1.reshape(hidden, C).T            # (C, hidden)
    w2t = w2.reshape(C, hidden).T            # (hidden, C)

    tb = _pick_batch_tile(B)

    # Choose a lane-aligned (multiple of 128) HW chunk so each input block is
    # ~<= max_block_bytes (the pipeline double-buffers it).
    itemsize = jnp.dtype(x.dtype).itemsize
    hw_pad = _round_up(hw, 128)
    if hw_tile is None:
        max_elems = max(128, max_block_bytes // (tb * C * itemsize))
        hw_tile = min(hw_pad, max(128, (max_elems // 128) * 128))
    else:
        hw_tile = min(hw_pad, max(128, _round_up(hw_tile, 128)))
    num_hw = pl.cdiv(hw, hw_tile)
    needs_mask = (num_hw * hw_tile) != hw
    # NOTE: if chunks end up small on v7x (very large C), a deeper x pipeline
    # (pl.Buffered(3)) and/or C-tiling would help; not needed at these budgets.

    kernel = functools.partial(
        _channel_attention_kernel,
        hw=hw, hw_tile=hw_tile, needs_mask=needs_mask)

    out = pl.pallas_call(
        kernel,
        out_shape=jax.ShapeDtypeStruct((B, C), x.dtype),
        grid_spec=pltpu.PrefetchScalarGridSpec(
            num_scalar_prefetch=0,
            grid=(pl.cdiv(B, tb), num_hw),
            in_specs=[
                pl.BlockSpec((tb, C, hw_tile), lambda b, k: (b, 0, k)),
                pl.BlockSpec((C, hidden), lambda b, k: (0, 0)),
                pl.BlockSpec((hidden, C), lambda b, k: (0, 0)),
            ],
            out_specs=pl.BlockSpec((tb, C), lambda b, k: (b, 0)),
            scratch_shapes=[
                pltpu.VMEM((tb, C, 128), jnp.float32),   # lane-partial running sum
                pltpu.VMEM((tb, C, 128), jnp.float32),   # lane-partial running max
            ],
        ),
        compiler_params=pltpu.CompilerParams(
            dimension_semantics=("parallel", "arbitrary"),
            vmem_limit_bytes=48 * 1024 * 1024,
        ),
    )(x3, w1t, w2t)

    return out.reshape(B, C, 1, 1)


def channel_attention_ref(x, w1, w2):
    """Pure-JAX reference mirroring the PyTorch forward."""
    B, C, H, W = x.shape
    hidden = w1.shape[0]
    xf = x.astype(jnp.float32)
    avg = jnp.mean(xf, axis=(2, 3))          # (B, C)
    mx = jnp.max(xf, axis=(2, 3))            # (B, C)
    w1m = w1.reshape(hidden, C).astype(jnp.float32)
    w2m = w2.reshape(C, hidden).astype(jnp.float32)

    def mlp(v):
        return jnp.maximum(v @ w1m.T, 0.0) @ w2m.T

    out = jax.nn.sigmoid(mlp(avg) + mlp(mx))
    return out.reshape(B, C, 1, 1).astype(x.dtype)


if __name__ == "__main__":
    B, C, H, W = 2, 8, 16, 16
    ratio = 4
    hidden = C // ratio

    key = jax.random.PRNGKey(0)
    kx, k1, k2 = jax.random.split(key, 3)

    x = jax.random.normal(kx, (B, C, H, W), dtype=jnp.float32)
    # Deterministic synthetic weights (PyTorch Conv2d weight shapes, bias=False).
    w1 = jax.random.normal(k1, (hidden, C, 1, 1), dtype=jnp.float32) * 0.5
    w2 = jax.random.normal(k2, (C, hidden, 1, 1), dtype=jnp.float32) * 0.5

    ref = channel_attention_ref(x, w1, w2)

    # 1) Default tiling (single 256-wide HW chunk, no mask).
    out = jax.block_until_ready(channel_attention(x, w1, w2))
    assert out.shape == (B, C, 1, 1)
    assert jnp.allclose(out, ref, atol=1e-5, rtol=1e-5), "mismatch (default tiling)"

    # 2) Force the multi-chunk HW-reduction path (2 chunks of 128).
    out2 = jax.block_until_ready(channel_attention(x, w1, w2, hw_tile=128))
    assert jnp.allclose(out2, ref, atol=1e-5, rtol=1e-5), "mismatch (tiled reduction)"

    # 3) Force the gated padded-tail masking path (hw=144, not a multiple of 128).
    x_odd = jax.random.normal(kx, (B, C, 12, 12), dtype=jnp.float32)
    ref_odd = channel_attention_ref(x_odd, w1, w2)
    out3 = jax.block_until_ready(channel_attention(x_odd, w1, w2, hw_tile=128))
    assert jnp.allclose(out3, ref_odd, atol=1e-5, rtol=1e-5), "mismatch (masked tail)"

    # 4) Single padded chunk (hw=144 rounded up to one 256-wide block, masked).
    out4 = jax.block_until_ready(channel_attention(x_odd, w1, w2))
    assert jnp.allclose(out4, ref_odd, atol=1e-5, rtol=1e-5), "mismatch (padded single chunk)"

    print("KERNEL_OK")
</pallas_src>

<mosaic_0001>
module attributes {stable_mosaic.version = 11 : i64} {
  func.func @_channel_attention_kernel(%arg0: i32, %arg1: i32, %arg2: memref<2x8x256xf32, #tpu.memory_space<vmem>>, %arg3: memref<8x2xf32, #tpu.memory_space<vmem>>, %arg4: memref<2x8xf32, #tpu.memory_space<vmem>>, %arg5: memref<2x8xf32, #tpu.memory_space<vmem>>, %arg6: memref<2x8x128xf32, #tpu.memory_space<vmem>>, %arg7: memref<2x8x128xf32, #tpu.memory_space<vmem>>) attributes {dimension_semantics = [#tpu.dimension_semantics<parallel>, #tpu.dimension_semantics<arbitrary>], iteration_bounds = array<i64: 1, 1>, scalar_prefetch = 0 : i64, scratch_operands = 2 : i64, tpu.core_type = #tpu.core_type<tc>, window_params = [{transform_indices = @transform_0, window_bounds = array<i64: 2, 8, 256>}, {pipeline_mode = #tpu.pipeline_mode<synchronous>, transform_indices = @transform_1, window_bounds = array<i64: 8, 2>}, {pipeline_mode = #tpu.pipeline_mode<synchronous>, transform_indices = @transform_2, window_bounds = array<i64: 2, 8>}, {transform_indices = @transform_3, window_bounds = array<i64: 2, 8>}]} {
    %c0_i32 = arith.constant 0 : i32
    %0 = arith.cmpi eq, %arg1, %c0_i32 : i32
    %1 = arith.extui %0 : i1 to i32
    %c0_i32_0 = arith.constant 0 : i32
    %2 = arith.cmpi ne, %1, %c0_i32_0 : i32
    scf.if %2 {
      %cst = arith.constant 0.000000e+00 : f32
      %20 = vector.broadcast %cst : f32 to vector<2x8x128xf32>
      %c0_31 = arith.constant 0 : index
      %c0_32 = arith.constant 0 : index
      %c0_33 = arith.constant 0 : index
      %21 = vector.load %arg6[%c0_31, %c0_32, %c0_33] : memref<2x8x128xf32, #tpu.memory_space<vmem>>, vector<2x8x128xf32>
      tpu.vector_store %arg6[%c0_31, %c0_32, %c0_33], %20 {strides = array<i32>} : memref<2x8x128xf32, #tpu.memory_space<vmem>>, vector<2x8x128xf32>,
      %cst_34 = arith.constant 0xFF800000 : f32
      %22 = vector.broadcast %cst_34 : f32 to vector<2x8x128xf32>
      %c0_35 = arith.constant 0 : index
      %c0_36 = arith.constant 0 : index
      %c0_37 = arith.constant 0 : index
      %23 = vector.load %arg7[%c0_35, %c0_36, %c0_37] : memref<2x8x128xf32, #tpu.memory_space<vmem>>, vector<2x8x128xf32>
      tpu.vector_store %arg7[%c0_35, %c0_36, %c0_37], %22 {strides = array<i32>} : memref<2x8x128xf32, #tpu.memory_space<vmem>>, vector<2x8x128xf32>,
    } else {
    }
    %c0 = arith.constant 0 : index
    %c0_1 = arith.constant 0 : index
    %c0_2 = arith.constant 0 : index
    %3 = vector.load %arg2[%c0, %c0_1, %c0_2] : memref<2x8x256xf32, #tpu.memory_space<vmem>>, vector<2x8x128xf32>
    %c0_3 = arith.constant 0 : index
    %c0_4 = arith.constant 0 : index
    %c0_5 = arith.constant 0 : index
    %4 = vector.load %arg6[%c0_3, %c0_4, %c0_5] : memref<2x8x128xf32, #tpu.memory_space<vmem>>, vector<2x8x128xf32>
    %5 = arith.addf %4, %3 : vector<2x8x128xf32>
    %c0_6 = arith.constant 0 : index
    %c0_7 = arith.constant 0 : index
    %c0_8 = arith.constant 0 : index
    %6 = vector.load %arg6[%c0_6, %c0_7, %c0_8] : memref<2x8x128xf32, #tpu.memory_space<vmem>>, vector<2x8x128xf32>
    tpu.vector_store %arg6[%c0_6, %c0_7, %c0_8], %5 {strides = array<i32>} : memref<2x8x128xf32, #tpu.memory_space<vmem>>, vector<2x8x128xf32>,
    %c0_9 = arith.constant 0 : index
    %c0_10 = arith.constant 0 : index
    %c0_11 = arith.constant 0 : index
    %7 = vector.load %arg7[%c0_9, %c0_10, %c0_11] : memref<2x8x128xf32, #tpu.memory_space<vmem>>, vector<2x8x128xf32>
    %8 = arith.maximumf %7, %3 : vector<2x8x128xf32>
    %c0_12 = arith.constant 0 : index
    %c0_13 = arith.constant 0 : index
    %c0_14 = arith.constant 0 : index
    %9 = vector.load %arg7[%c0_12, %c0_13, %c0_14] : memref<2x8x128xf32, #tpu.memory_space<vmem>>, vector<2x8x128xf32>
    tpu.vector_store %arg7[%c0_12, %c0_13, %c0_14], %8 {strides = array<i32>} : memref<2x8x128xf32, #tpu.memory_space<vmem>>, vector<2x8x128xf32>,
    %c0_15 = arith.constant 0 : index
    %c0_16 = arith.constant 0 : index
    %c128 = arith.constant 128 : index
    %10 = vector.load %arg2[%c0_15, %c0_16, %c128] : memref<2x8x256xf32, #tpu.memory_space<vmem>>, vector<2x8x128xf32>
    %c0_17 = arith.constant 0 : index
    %c0_18 = arith.constant 0 : index
    %c0_19 = arith.constant 0 : index
    %11 = vector.load %arg6[%c0_17, %c0_18, %c0_19] : memref<2x8x128xf32, #tpu.memory_space<vmem>>, vector<2x8x128xf32>
    %12 = arith.addf %11, %10 : vector<2x8x128xf32>
    %c0_20 = arith.constant 0 : index
    %c0_21 = arith.constant 0 : index
    %c0_22 = arith.constant 0 : index
    %13 = vector.load %arg6[%c0_20, %c0_21, %c0_22] : memref<2x8x128xf32, #tpu.memory_space<vmem>>, vector<2x8x128xf32>
    tpu.vector_store %arg6[%c0_20, %c0_21, %c0_22], %12 {strides = array<i32>} : memref<2x8x128xf32, #tpu.memory_space<vmem>>, vector<2x8x128xf32>,
    %c0_23 = arith.constant 0 : index
    %c0_24 = arith.constant 0 : index
    %c0_25 = arith.constant 0 : index
    %14 = vector.load %arg7[%c0_23, %c0_24, %c0_25] : memref<2x8x128xf32, #tpu.memory_space<vmem>>, vector<2x8x128xf32>
    %15 = arith.maximumf %14, %10 : vector<2x8x128xf32>
    %c0_26 = arith.constant 0 : index
    %c0_27 = arith.constant 0 : index
    %c0_28 = arith.constant 0 : index
    %16 = vector.load %arg7[%c0_26, %c0_27, %c0_28] : memref<2x8x128xf32, #tpu.memory_space<vmem>>, vector<2x8x128xf32>
    tpu.vector_store %arg7[%c0_26, %c0_27, %c0_28], %15 {strides = array<i32>} : memref<2x8x128xf32, #tpu.memory_space<vmem>>, vector<2x8x128xf32>,
    %c0_i32_29 = arith.constant 0 : i32
    %17 = arith.cmpi eq, %arg1, %c0_i32_29 : i32
    %18 = arith.extui %17 : i1 to i32
    %c0_i32_30 = arith.constant 0 : i32
    %19 = arith.cmpi ne, %18, %c0_i32_30 : i32
    scf.if %19 {
      %c0_31 = arith.constant 0 : index
      %c0_32 = arith.constant 0 : index
      %c0_33 = arith.constant 0 : index
      %20 = vector.load %arg6[%c0_31, %c0_32, %c0_33] : memref<2x8x128xf32, #tpu.memory_space<vmem>>, vector<2x8x128xf32>
      %cst = arith.constant dense<0.000000e+00> : vector<2x8xf32>
      %21 = vector.multi_reduction <add>, %20, %cst [2] : vector<2x8x128xf32> to vector<2x8xf32>
      %cst_34 = arith.constant 3.906250e-03 : f32
      %22 = vector.broadcast %cst_34 : f32 to vector<2x8xf32>
      %23 = arith.mulf %21, %22 : vector<2x8xf32>
      %c0_35 = arith.constant 0 : index
      %c0_36 = arith.constant 0 : index
      %c0_37 = arith.constant 0 : index
      %24 = vector.load %arg7[%c0_35, %c0_36, %c0_37] : memref<2x8x128xf32, #tpu.memory_space<vmem>>, vector<2x8x128xf32>
      %cst_38 = arith.constant dense<0xFF800000> : vector<2x8xf32>
      %25 = vector.multi_reduction <maximumf>, %24, %cst_38 [2] : vector<2x8x128xf32> to vector<2x8xf32>
      %c0_39 = arith.constant 0 : index
      %c0_40 = arith.constant 0 : index
      %26 = vector.load %arg3[%c0_39, %c0_40] : memref<8x2xf32, #tpu.memory_space<vmem>>, vector<8x2xf32>
      %c0_41 = arith.constant 0 : index
      %c0_42 = arith.constant 0 : index
      %27 = vector.load %arg4[%c0_41, %c0_42] : memref<2x8xf32, #tpu.memory_space<vmem>>, vector<2x8xf32>
      %cst_43 = arith.constant dense<0.000000e+00> : vector<2x2xf32>
      %28 = tpu.matmul %23, %26, %cst_43 {dimension_numbers = #tpu.dot_dimension_numbers<[1], [0], [0], [1], [0, 0, 1, 1], [], []>} : vector<2x8xf32>, vector<8x2xf32>, vector<2x2xf32> -> vector<2x2xf32>
      %cst_44 = arith.constant 0.000000e+00 : f32
      %29 = vector.broadcast %cst_44 : f32 to vector<2x2xf32>
      %30 = arith.maximumf %28, %29 : vector<2x2xf32>
      %cst_45 = arith.constant dense<0.000000e+00> : vector<2x2xf32>
      %31 = tpu.matmul %25, %26, %cst_45 {dimension_numbers = #tpu.dot_dimension_numbers<[1], [0], [0], [1], [0, 0, 1, 1], [], []>} : vector<2x8xf32>, vector<8x2xf32>, vector<2x2xf32> -> vector<2x2xf32>
      %cst_46 = arith.constant 0.000000e+00 : f32
      %32 = vector.broadcast %cst_46 : f32 to vector<2x2xf32>
      %33 = arith.maximumf %31, %32 : vector<2x2xf32>
      %34 = arith.addf %30, %33 : vector<2x2xf32>
      %cst_47 = arith.constant dense<0.000000e+00> : vector<2x8xf32>
      %35 = tpu.matmul %34, %27, %cst_47 {dimension_numbers = #tpu.dot_dimension_numbers<[1], [0], [0], [1], [0, 0, 1, 1], [], []>} : vector<2x2xf32>, vector<2x8xf32>, vector<2x8xf32> -> vector<2x8xf32>
      %36 = arith.negf %35 : vector<2x8xf32>
      %37 = math.exp %36 : vector<2x8xf32>
      %cst_48 = arith.constant 1.000000e+00 : f32
      %38 = vector.broadcast %cst_48 : f32 to vector<2x8xf32>
      %39 = arith.addf %38, %37 : vector<2x8xf32>
      %40 = arith.divf %38, %39 : vector<2x8xf32>
      %c0_49 = arith.constant 0 : index
      %c0_50 = arith.constant 0 : index
      %41 = vector.load %arg5[%c0_49, %c0_50] : memref<2x8xf32, #tpu.memory_space<vmem>>, vector<2x8xf32>
      tpu.vector_store %arg5[%c0_49, %c0_50], %40 {strides = array<i32>} : memref<2x8xf32, #tpu.memory_space<vmem>>, vector<2x8xf32>,
    } else {
    }
    return
  }
  func.func @transform_0(%arg0: i32, %arg1: i32) -> (i32, i32, i32) {
    %c0_i32 = arith.constant 0 : i32
    %c0_i32_0 = arith.constant 0 : i32
    return %arg0, %c0_i32, %arg1 : i32, i32, i32
  }
  func.func @transform_1(%arg0: i32, %arg1: i32) -> (i32, i32) {
    %c0_i32 = arith.constant 0 : i32
    %c0_i32_0 = arith.constant 0 : i32
    %c0_i32_1 = arith.constant 0 : i32
    return %c0_i32, %c0_i32_0 : i32, i32
  }
  func.func @transform_2(%arg0: i32, %arg1: i32) -> (i32, i32) {
    %c0_i32 = arith.constant 0 : i32
    %c0_i32_0 = arith.constant 0 : i32
    %c0_i32_1 = arith.constant 0 : i32
    return %c0_i32, %c0_i32_0 : i32, i32
  }
  func.func @transform_3(%arg0: i32, %arg1: i32) -> (i32, i32) {
    %c0_i32 = arith.constant 0 : i32
    %c0_i32_0 = arith.constant 0 : i32
    return %arg0, %c0_i32 : i32, i32
  }
}

</mosaic_0001>

<bundles_post_ra>
// kernel: tpu_custom_call.1
= control target key start
LH: loop header
LB: loop body
LE: loop exit
PB: predicated region body
PF: predicated region fallthrough
CT: control target
= control target key end

     0   :  { %8 = vsyncpa [#allocation5], 0  ;;  %s501_s0 = inlined_call_operand.hbm [shape: f32[2,8,256], index: 0, kind: input, shape index: {}]   ;;  %s502_s1 = inlined_call_operand.vmem [shape: f32[8,2], index: 1, kind: input, shape index: {}]   ;;  %s503_s2 = inlined_call_operand.vmem [shape: f32[2,8], index: 2, kind: input, shape index: {}]   ;;  %s504_s3 = inlined_call_operand.hbm [shape: f32[2,8], index: 3, kind: output, shape index: {}]  }
   0x1   :  { %9 = vsyncpa [#allocation6], 0  ;;  %s442_s12 = smov [#allocation4]   ;;  %s394_s16 = scalar_lea.hbm %s501_s0, 512 }
   0x2   :  { %s15_s13 = sshll.u32 %s442_s12, 4  ;;  %p395_p0 = scmp.ne.s32.totalorder %s501_s0, %s394_s16  ;;  %s16_s13 = int_to_ptr.vmem [resolvable:$true] %s15_s13 }
   0x3   :  { %p398_p1 = scmp.lt.u32.totalorder %s394_s16, %s501_s0 }
   0x5   :  { %p400_p2 = pnand %p398_p1, %p395_p0 }
   0x7   :  { %403 = shalt.err (!%p400_p2)
}
   0x8   :  { %s404_s21 = scalar_lea.vmem %s16_s13, 512  ;;  %p409_p4 = scmp.lt.s32.totalorder %s16_s13, %s16_s13 }
   0x9   :  { %p405_p3 = scmp.ne.s32.totalorder %s16_s13, %s404_s21  ;;  %p410_p5 = scmp.lt.s32.totalorder %s404_s21, %s404_s21 }
   0xb   :  { %p411_p6 = por %p410_p5, %p409_p4 }
   0xd   :  { %p412_p7 = pnand %p411_p6, %p405_p3 }
   0xf   :  { %415 = shalt.err (!%p412_p7)
}
  0x10   :  { %s443_s22 = smov 256   ;;  %s444_s23 = smov 16  }
  0x11   :  { %21 = dma.hbm_to_vmem [thread:$0]  %s501_s0, 512, %s16_s13, [#allocation5], %s443_s22, %s443_s22, %s444_s23  }
  0x12   :  { %438 = dma.done.wait [#allocation5], 512  }
  0x13   :  { %439 = vsyncadd [#allocation5], 4294966784  ;;  %v37_v0 = vld [vmem:[#allocation4] sm:$0xff]  ;;  %v51_v1 = vld [vmem:[#allocation4 + $0x8] sm:$0xff]  ;;  %v445_v8 = vmov 0.0   ;;  %vm446_vm0 = vmmov 0   ;;  %v86_v10 = vlaneseq }
  0x14   :  { %v38_v2 = vld [vmem:[#allocation4 + $0x10] sm:$0xff]  ;;  %v61_v3 = vmax.f32 %v37_v0, %v51_v1  ;;  %v55_v4 = vadd.f32 %v51_v1, %v37_v0  ;;  %v52_v5 = vld [vmem:[#allocation4 + $0x18] sm:$0xff]  ;;  %374 = vmatprep.subr.mxu1 %v445_v8  ;;  %v82_v9 = vld [vmem:[%s502_s1] sm:$0xff]  ;;  %369 = vmatprep.subr.mxu0 %v445_v8  ;;  %vm96_vm1 = vcmask 1041409   ;;  %vm98_vm2 = vcmask 64512   ;;  %s447_s28 = smov [#allocation7]  }
  0x15   :  { %v62_v6 = vmax.f32 %v38_v2, %v52_v5  ;;  %v56_v7 = vadd.f32 %v52_v5, %v38_v2  ;;  %375 = vmatpush3.msra.mxu1 %v82_v9  ;;  %376 = vmatprep.mubr.msk.f32.mxu1 %vm446_vm0, %v445_v8  ;;  %v87_v11 = vand.u32 127, %v86_v10  ;;  %v89_v12 = vshrl.u32 %v86_v10, 7  ;;  %v83_v26 = vld [vmem:[%s503_s2] sm:$0x3]  ;;  %s349_s2 = sshll.u32 %s447_s28, 4  ;;  %s350_s2 = int_to_ptr.vmem [resolvable:$true] %s349_s2 }
  0x16   :  { %78 = vmax.xlane.f32.xlu1 %v61_v3  ;;  %70 = vadd.xlane.f32.xlu0 %v55_v4  ;;  %vm261_vm3 = vcmask 1041408   ;;  %vm257_vm4 = vcmask 15360   ;;  %vm341_vm5 = vcmask 58368   ;;  %s416_s29 = scalar_lea.vmem %s350_s2, 32  ;;  %p421_p9 = scmp.lt.s32.totalorder %s350_s2, %s350_s2 }
  0x17   :  { %370 = vmatpush3.msra.mxu0 %v82_v9  ;;  %371 = vmatprep.mubr.msk.f32.mxu0 %vm446_vm0, %v445_v8  ;;  %v90_v15 = vsub.s32 %v87_v11, %v89_v12  ;;  %p417_p8 = scmp.ne.s32.totalorder %s350_s2, %s416_s29  ;;  %p422_p10 = scmp.lt.s32.totalorder %s416_s29, %s416_s29 }
  0x18   :  { %379 = vmatprep.subr.mxu0 %v445_v8 }
  0x19   :  { %p423_p11 = por %p422_p10, %p421_p9 }
  0x1a   :  { %80 = vmax.xlane.f32.xlu1 %v62_v6  ;;  %72 = vadd.xlane.f32.xlu0 %v56_v7 }
  0x1b   :  { %p424_p12 = pnand %p423_p11, %p417_p8 }
  0xa3   :  { %v79_v13 = vpop.xlane.xlu1 %78  ;;  %v71_v14 = vpop.xlane.xlu0 %70 }
  0xa4   :  { %v74_v16 = vmul.f32 0.00390625, %v71_v14  ;;  %v177_v19 = vrot.slane %v79_v13, %v90_v15 }
  0xa6   :  { %v91_v22 = vrot.slane %v74_v16, %v90_v15 }
  0xa7   :  { %v81_v17 = vpop.xlane.xlu1 %80  ;;  %v73_v18 = vpop.xlane.xlu0 %72 }
  0xa8   :  { %v181_v20 = vrot.slane %v81_v17, %v90_v15  ;;  %v75_v21 = vmul.f32 0.00390625, %v73_v18 }
  0xaa   :  { %v95_v23 = vrot.slane %v75_v21, %v90_v15  ;;  %v182_v24 = vsel %vm96_vm1, %v181_v20, %v177_v19 }
  0xab   :  { %377 = vmatmul.mubr.msk.f32.vlgmr.msra.gmra.mrb[0].mxu1 %vm98_vm2, %v182_v24 }
  0xac   :  { %v97_v25 = vsel %vm96_vm1, %v95_v23, %v91_v22 }
  0xad   :  { %372 = vmatmul.mubr.msk.f32.vlgmr.msra.gmra.mrb[0].mxu0 %vm98_vm2, %v97_v25 }
  0xae   :  { %381 = vmatprep.mubr.msk.f32.mxu0 %vm446_vm0, %v445_v8  ;;  %380 = vmatpush3.msk.msra.mxu0 %vm261_vm3, %v83_v26 }
 0x17e   :  { %v251_v27 = vpop.f32.mrb[0].mxu1 }
 0x17f   :  { %v378_v28 = vpop.f32.mrb[1].mxu1  ;;  %v255_v30 = vmax.f32 %v251_v27, 0.0 }
 0x180   :  { %v167_v29 = vpop.f32.mrb[0].mxu0 }
 0x181   :  { %v171_v31 = vmax.f32 %v167_v29, 0.0  ;;  %v373_v32 = vpop.f32.mrb[1].mxu0 }
 0x183   :  { %v256_v33 = vadd.f32 %v255_v30, %v171_v31 }
 0x185   :  { %382 = vmatmul.mubr.msk.f32.vlgmr.msra.gmra.mrb[2].mxu0 %vm257_vm4, %v256_v33 }
 0x258   :  { %v331_v34 = vpop.f32.mrb[2].mxu0 }
 0x259   :  { %v362_v35 = vmul.f32 -1.442695, %v331_v34  ;;  %v383_v36 = vpop.f32.mrb[3].mxu0 }
 0x25b   :  { %390 = vpow2.f32 %v362_v35 }
 0x265   :  { %v391_v37 = vpop.eup %390 }
 0x266   :  { %v338_v38 = vadd.f32 1.0, %v391_v37 }
 0x268   :  { %392 = vrcp.f32 %v338_v38 }
 0x272   :  { %v393_v39 = vpop.eup %392 }
 0x273   :  { %342 = vst.msk [vmem:[#allocation7] sm:$0x3] %vm341_vm5, %v393_v39 }
 0x274   :  { %427 = shalt.err (!%p424_p12)
}
 0x275   :  { %s428_s5 = scalar_lea.hbm %s504_s3, 32 }
 0x276   :  { %p429_p13 = scmp.ne.s32.totalorder %s504_s3, %s428_s5  ;;  %p432_p0 = scmp.lt.u32.totalorder %s428_s5, %s504_s3 }
 0x278   :  { %p434_p1 = pnand %p432_p0, %p429_p13 }
 0x27a   :  { %437 = shalt.err (!%p434_p1)
}
 0x27b   :  { %352 = dma.vmem_to_hbm [thread:$0]  %s350_s2, 32, %s504_s3, [#allocation6]  }
 0x27c   :  { %440 = dma.done.wait [#allocation6], 32  }
 0x27d   :  { %441 = vsyncadd [#allocation6], 4294967264 }
 0x27e   :  { %356 = vsyncpa [#allocation5], 1 }
 0x27f   :  { %357 = vsyncpa [#allocation6], 1 }

</bundles_post_ra>
